<compile_context>
chip_gen: v6e
topology: v6e:2x2x1
jax: 0.10.0
libtpu: 0.0.40
codegen_flags: <defaults>
</compile_context>

<pallas_src>
import jax
import jax.numpy as jnp
from jax.experimental import pallas as pl
from jax.experimental.pallas import tpu as pltpu

V = 100      # vocabulary slice size per direction
VPAD = 128   # V padded to the 128-lane width


# ---------------------------------------------------------------------------
# Pallas kernel: one token tile per grid step.
#   idx_ref   : (T, 1)        int32   -- token ids, pre-offset by table_id*VPAD
#   table_ref : (2*VPAD, D)   float32 -- stacked padded sub-tables (resident)
#   out_ref   : (T, D)        float32 -- embedded tokens
# ---------------------------------------------------------------------------
def _embed_kernel(idx_ref, table_ref, out_ref):
    idx = idx_ref[...]                                   # (T, 1) int32
    tab = table_ref[...]                                 # (K, D) f32, K = 256
    T = idx.shape[0]
    K = tab.shape[0]
    iota = jax.lax.broadcasted_iota(jnp.int32, (T, K), 1)
    onehot = (iota == idx).astype(jnp.float32)           # (T, K) broadcast-compare
    out_ref[...] = jnp.dot(onehot, tab, preferred_element_type=jnp.float32)


def _round_up(x, m):
    return ((x + m - 1) // m) * m


def _run_embedding(ids_flat, tables, *, tile=512):
    """ids_flat: (N,) int32, already offset into the stacked table rows.
    tables: (2*VPAD, D) float32.  Returns (N, D) float32."""
    N = ids_flat.shape[0]
    D = tables.shape[1]
    T = min(tile, _round_up(N, 8))        # small inputs -> single small tile
    N_pad = _round_up(N, T)
    ids = jnp.pad(ids_flat.astype(jnp.int32), (0, N_pad - N)).reshape(N_pad, 1)

    grid_spec = pltpu.PrefetchScalarGridSpec(
        num_scalar_prefetch=0,
        grid=(N_pad // T,),
        in_specs=[
            pl.BlockSpec((T, 1), lambda t: (t, 0)),          # token ids, sublane-major
            pl.BlockSpec(tables.shape, lambda t: (0, 0)),    # table, VMEM-resident
        ],
        out_specs=pl.BlockSpec((T, D), lambda t: (t, 0)),    # lane-dense 2-D output
    )

    out = pl.pallas_call(
        _embed_kernel,
        out_shape=jax.ShapeDtypeStruct((N_pad, D), jnp.float32),
        grid_spec=grid_spec,
        compiler_params=pltpu.CompilerParams(
            dimension_semantics=("parallel",)),
    )(ids, tables)
    return out[:N]


# ---------------------------------------------------------------------------
# Module-equivalent wrapper
# ---------------------------------------------------------------------------
class OrthoEmbeddingBidirectional:
    def __init__(self, dec_d_model, padding_idx, key):
        assert dec_d_model >= 300, "need at least 300 rows for the [100:300] slices"
        # Deterministic orthogonal init (QR with sign correction, matching
        # torch.nn.init.orthogonal_ semantics for square matrices).
        a = jax.random.normal(key, (dec_d_model, dec_d_model), dtype=jnp.float32)
        q, r = jnp.linalg.qr(a)
        q = q * jnp.sign(jnp.diagonal(r))[None, :]
        weight = q.astype(jnp.float32)
        self.weight_backup = weight
        zero_row = jnp.zeros((dec_d_model,), jnp.float32)
        for row in (padding_idx, padding_idx + 100, padding_idx + 200):
            weight = weight.at[row].set(zero_row)
        self.weight = weight
        # Stacked, lane-padded sub-tables: rows [0:100] = LR, rows [128:228] = RL,
        # remaining rows are zeros (cannot affect the one-hot matmul).
        tabs = jnp.zeros((2 * VPAD, dec_d_model), jnp.float32)
        tabs = tabs.at[0:V].set(weight[100:200])
        tabs = tabs.at[VPAD:VPAD + V].set(weight[200:300])
        self.tables = tabs

    def __call__(self, x, direc):
        B, S = x.shape
        x = x.astype(jnp.int32)
        if direc == 'LR':
            off = jnp.zeros((B, 1), jnp.int32)
        elif direc == 'RL':
            off = jnp.full((B, 1), VPAD, dtype=jnp.int32)
        else:
            half = B // 2
            off = jnp.where(jnp.arange(B)[:, None] < half, 0, VPAD).astype(jnp.int32)
        ids = (x + off).reshape(-1)                       # fused LR/RL token stream
        out = _run_embedding(ids, self.tables)
        return out.reshape(B, S, self.tables.shape[1])


# ---------------------------------------------------------------------------
# Pure-JAX reference for verification
# ---------------------------------------------------------------------------
def _reference(module, x, direc):
    if direc == 'LR':
        return jnp.take(module.weight[100:200], x, axis=0)
    elif direc == 'RL':
        return jnp.take(module.weight[200:300], x, axis=0)
    else:
        half = x.shape[0] // 2
        return jnp.concatenate(
            [jnp.take(module.weight[100:200], x[:half], axis=0),
             jnp.take(module.weight[200:300], x[half:], axis=0)], axis=0)


if __name__ == "__main__":
    key = jax.random.PRNGKey(0)
    k_w, k_x1, k_x2 = jax.random.split(key, 3)

    dec_d_model = 320        # must be >= 300 so weight[200:300] exists
    padding_idx = 1

    module = OrthoEmbeddingBidirectional(dec_d_model, padding_idx, k_w)

    # Small single-tile case.
    x_small = jax.random.randint(k_x1, (4, 8), 0, 100, dtype=jnp.int32)
    # Multi-tile case (N = 640 tokens -> 2 grid steps at T = 512).
    x_multi = jax.random.randint(k_x2, (4, 160), 0, 100, dtype=jnp.int32)

    for x in (x_small, x_multi):
        for direc in ('LR', 'RL', 'BOTH'):
            out = module(x, direc)
            out = jax.block_until_ready(out)
            ref = _reference(module, x, direc)
            if not jnp.allclose(out, ref, atol=1e-6):
                raise AssertionError(
                    f"mismatch for direc={direc}, x.shape={x.shape}")

    print("KERNEL_OK")
</pallas_src>

<mosaic_0001>
module attributes {stable_mosaic.version = 11 : i64} {
  func.func @_embed_kernel(%arg0: i32, %arg1: memref<32x1xi32, #tpu.memory_space<vmem>>, %arg2: memref<256x320xf32, #tpu.memory_space<vmem>>, %arg3: memref<32x320xf32, #tpu.memory_space<vmem>>) attributes {dimension_semantics = [#tpu.dimension_semantics<parallel>], iteration_bounds = array<i64: 1>, scalar_prefetch = 0 : i64, scratch_operands = 0 : i64, tpu.core_type = #tpu.core_type<tc>, window_params = [{transform_indices = @transform_0, window_bounds = array<i64: 32, 1>}, {pipeline_mode = #tpu.pipeline_mode<synchronous>, transform_indices = @transform_1, window_bounds = array<i64: 256, 320>}, {transform_indices = @transform_2, window_bounds = array<i64: 32, 320>}]} {
    %c0 = arith.constant 0 : index
    %c0_0 = arith.constant 0 : index
    %0 = vector.load %arg1[%c0, %c0_0] : memref<32x1xi32, #tpu.memory_space<vmem>>, vector<32x1xi32>
    %c0_1 = arith.constant 0 : index
    %c0_2 = arith.constant 0 : index
    %1 = vector.load %arg2[%c0_1, %c0_2] : memref<256x320xf32, #tpu.memory_space<vmem>>, vector<256x320xf32>
    %2 = tpu.iota {dimensions = array<i32: 1>} : vector<32x256xi32>
    %3 = vector.broadcast %0 : vector<32x1xi32> to vector<32x256xi32>
    %4 = arith.cmpi eq, %2, %3 : vector<32x256xi32>
    %5 = arith.extui %4 : vector<32x256xi1> to vector<32x256xi32>
    %6 = arith.sitofp %5 : vector<32x256xi32> to vector<32x256xf32>
    %cst = arith.constant dense<0.000000e+00> : vector<32x320xf32>
    %7 = tpu.matmul %6, %1, %cst {dimension_numbers = #tpu.dot_dimension_numbers<[1], [0], [0], [1], [0, 0, 1, 1], [], []>} : vector<32x256xf32>, vector<256x320xf32>, vector<32x320xf32> -> vector<32x320xf32>
    %c0_3 = arith.constant 0 : index
    %c0_4 = arith.constant 0 : index
    %8 = vector.load %arg3[%c0_3, %c0_4] : memref<32x320xf32, #tpu.memory_space<vmem>>, vector<32x320xf32>
    tpu.vector_store %arg3[%c0_3, %c0_4], %7 {strides = array<i32>} : memref<32x320xf32, #tpu.memory_space<vmem>>, vector<32x320xf32>,
    return
  }
  func.func @transform_0(%arg0: i32) -> (i32, i32) {
    %c0_i32 = arith.constant 0 : i32
    %c0_i32_0 = arith.constant 0 : i32
    return %arg0, %c0_i32 : i32, i32
  }
  func.func @transform_1(%arg0: i32) -> (i32, i32) {
    %c0_i32 = arith.constant 0 : i32
    %c0_i32_0 = arith.constant 0 : i32
    %c0_i32_1 = arith.constant 0 : i32
    return %c0_i32, %c0_i32_0 : i32, i32
  }
  func.func @transform_2(%arg0: i32) -> (i32, i32) {
    %c0_i32 = arith.constant 0 : i32
    %c0_i32_0 = arith.constant 0 : i32
    return %arg0, %c0_i32 : i32, i32
  }
}

</mosaic_0001>

<bundles_post_ra>
// kernel: tpu_custom_call.1
= control target key start
LH: loop header
LB: loop body
LE: loop exit
PB: predicated region body
PF: predicated region fallthrough
CT: control target
= control target key end

     0   :  { %v451_v2 = vmov 0   ;;  %s778_s0 = inlined_call_operand.vmem [shape: s32[32,1], index: 0, kind: input, shape index: {}]   ;;  %s779_s1 = inlined_call_operand.vmem [shape: f32[256,320], index: 1, kind: input, shape index: {}]   ;;  %s780_s2 = inlined_call_operand.hbm [shape: f32[32,320], index: 2, kind: output, shape index: {}]  }
   0x1   :  { %v12_v0 = vld [vmem:[%s778_s0] sm:$0xff]  ;;  %v14_v1 = vld [vmem:[%s778_s0 + $0x10] sm:$0xff]  ;;  %427 = vset.pattern.permute.xlu0 %v451_v2  ;;  %428 = vset.pattern.permute.xlu1 %v451_v2  ;;  %v61_v4 = vld [vmem:[%s779_s1 + $0x168] sm:$0xff] }
   0x2   :  { %v62_v3 = vld [vmem:[%s779_s1 + $0x170] sm:$0xff]  ;;  %116 = vperm.xlu0 %427, %v12_v0   ;;  %122 = vperm.xlu1 %428, %v14_v1   ;;  %v59_v5 = vld [vmem:[%s779_s1 + $0x158] sm:$0xff]  ;;  %v13_v6 = vld [vmem:[%s778_s0 + $0x8] sm:$0xff] }
   0x3   :  { %v15_v7 = vld [vmem:[%s778_s0 + $0x18] sm:$0xff]  ;;  %151 = vmatprep.subr.mxu0 %v62_v3  ;;  %v58_v8 = vld [vmem:[%s779_s1 + $0x150] sm:$0xff]  ;;  %v56_v9 = vld [vmem:[%s779_s1 + $0x140] sm:$0xff] }
   0x4   :  { %152 = vmatpush1.msra.mxu0 %v61_v4  ;;  %v55_v10 = vld [vmem:[%s779_s1 + $0x138] sm:$0xff]  ;;  %v53_v11 = vld [vmem:[%s779_s1 + $0x128] sm:$0xff]  ;;  %v52_v12 = vld [vmem:[%s779_s1 + $0x120] sm:$0xff] }
   0x5   :  { %153 = vmatprep.subr.mxu0 %v59_v5  ;;  %v50_v13 = vld [vmem:[%s779_s1 + $0x110] sm:$0xff]  ;;  %v49_v14 = vld [vmem:[%s779_s1 + $0x108] sm:$0xff]  ;;  %v47_v15 = vld [vmem:[%s779_s1 + $0xf8] sm:$0xff] }
   0x6   :  { %119 = vperm.xlu0 %427, %v13_v6   ;;  %125 = vperm.xlu1 %428, %v15_v7   ;;  %v46_v16 = vld [vmem:[%s779_s1 + $0xf0] sm:$0xff]  ;;  %v111_v17 = vld [vmem:[%s779_s1 + $0x2f8] sm:$0xff]  ;;  %v44_v18 = vld [vmem:[%s779_s1 + $0xe0] sm:$0xff] }
   0x7   :  { %154 = vmatpush1.msra.mxu0 %v58_v8  ;;  %378 = vmatprep.subr.mxu1 %v111_v17  ;;  %v63_v19 = vld [vmem:[%s779_s1 + $0x178] sm:$0xff]  ;;  %v108_v20 = vld [vmem:[%s779_s1 + $0x2e0] sm:$0xff]  ;;  %v41_v23 = vld [vmem:[%s779_s1 + $0xc8] sm:$0xff] }
   0x8   :  { %155 = vmatprep.subr.mxu0 %v56_v9  ;;  %v43_v21 = vld [vmem:[%s779_s1 + $0xd8] sm:$0xff]  ;;  %379 = vmatpush3.msra.mxu1 %v63_v19  ;;  %v60_v22 = vld [vmem:[%s779_s1 + $0x160] sm:$0xff]  ;;  %v105_v24 = vld [vmem:[%s779_s1 + $0x2c8] sm:$0xff] }
   0x9   :  { %156 = vmatpush1.msra.mxu0 %v55_v10  ;;  %380 = vmatprep.subr.mxu1 %v108_v20  ;;  %v57_v25 = vld [vmem:[%s779_s1 + $0x148] sm:$0xff]  ;;  %v40_v26 = vld [vmem:[%s779_s1 + $0xc0] sm:$0xff]  ;;  %v102_v27 = vld [vmem:[%s779_s1 + $0x2b0] sm:$0xff] }
   0xa   :  { %157 = vmatprep.subr.mxu0 %v53_v11  ;;  %381 = vmatpush3.msra.mxu1 %v60_v22  ;;  %v38_v28 = vld [vmem:[%s779_s1 + $0xb0] sm:$0xff]  ;;  %v37_v30 = vld [vmem:[%s779_s1 + $0xa8] sm:$0xff]  ;;  %v99_v31 = vld [vmem:[%s779_s1 + $0x298] sm:$0xff] }
   0xb   :  { %158 = vmatpush1.msra.mxu0 %v52_v12  ;;  %382 = vmatprep.subr.mxu1 %v105_v24  ;;  %v54_v29 = vld [vmem:[%s779_s1 + $0x130] sm:$0xff]  ;;  %v35_v32 = vld [vmem:[%s779_s1 + $0x98] sm:$0xff]  ;;  %v96_v35 = vld [vmem:[%s779_s1 + $0x280] sm:$0xff] }
   0xc   :  { %159 = vmatprep.subr.mxu0 %v50_v13  ;;  %383 = vmatpush3.msra.mxu1 %v57_v25  ;;  %v51_v33 = vld [vmem:[%s779_s1 + $0x118] sm:$0xff]  ;;  %v34_v34 = vld [vmem:[%s779_s1 + $0x90] sm:$0xff]  ;;  %v32_v36 = vld [vmem:[%s779_s1 + $0x80] sm:$0xff] }
   0xd   :  { %160 = vmatpush1.msra.mxu0 %v49_v14  ;;  %384 = vmatprep.subr.mxu1 %v102_v27  ;;  %v48_v37 = vld [vmem:[%s779_s1 + $0x100] sm:$0xff]  ;;  %v31_v38 = vld [vmem:[%s779_s1 + $0x78] sm:$0xff]  ;;  %v93_v39 = vld [vmem:[%s779_s1 + $0x268] sm:$0xff] }
   0xe   :  { %161 = vmatprep.subr.mxu0 %v47_v15  ;;  %385 = vmatpush3.msra.mxu1 %v54_v29  ;;  %v29_v40 = vld [vmem:[%s779_s1 + $0x68] sm:$0xff]  ;;  %v28_v42 = vld [vmem:[%s779_s1 + $0x60] sm:$0xff]  ;;  %v90_v43 = vld [vmem:[%s779_s1 + $0x250] sm:$0xff] }
   0xf   :  { %162 = vmatpush1.msra.mxu0 %v46_v16  ;;  %386 = vmatprep.subr.mxu1 %v99_v31  ;;  %v45_v41 = vld [vmem:[%s779_s1 + $0xe8] sm:$0xff]  ;;  %v26_v44 = vld [vmem:[%s779_s1 + $0x50] sm:$0xff]  ;;  %v87_v47 = vld [vmem:[%s779_s1 + $0x238] sm:$0xff] }
  0x10   :  { %163 = vmatprep.subr.mxu0 %v44_v18  ;;  %387 = vmatpush3.msra.mxu1 %v51_v33  ;;  %v42_v45 = vld [vmem:[%s779_s1 + $0xd0] sm:$0xff]  ;;  %v25_v46 = vld [vmem:[%s779_s1 + $0x48] sm:$0xff]  ;;  %v23_v48 = vld [vmem:[%s779_s1 + $0x38] sm:$0xff] }
  0x11   :  { %164 = vmatpush1.msra.mxu0 %v43_v21  ;;  %388 = vmatprep.subr.mxu1 %v96_v35  ;;  %v39_v49 = vld [vmem:[%s779_s1 + $0xb8] sm:$0xff]  ;;  %v22_v50 = vld [vmem:[%s779_s1 + $0x30] sm:$0xff]  ;;  %v84_v51 = vld [vmem:[%s779_s1 + $0x220] sm:$0xff] }
  0x12   :  { %165 = vmatprep.subr.mxu0 %v41_v23  ;;  %389 = vmatpush3.msra.mxu1 %v48_v37  ;;  %v20_v52 = vld [vmem:[%s779_s1 + $0x20] sm:$0xff]  ;;  %v19_v54 = vld [vmem:[%s779_s1 + $0x18] sm:$0xff]  ;;  %v81_v55 = vld [vmem:[%s779_s1 + $0x208] sm:$0xff] }
  0x13   :  { %166 = vmatpush1.msra.mxu0 %v40_v26  ;;  %390 = vmatprep.subr.mxu1 %v93_v39  ;;  %v36_v53 = vld [vmem:[%s779_s1 + $0xa0] sm:$0xff]  ;;  %v17_v56 = vld [vmem:[%s779_s1 + $0x8] sm:$0xff]  ;;  %v78_v59 = vld [vmem:[%s779_s1 + $0x1f0] sm:$0xff] }
  0x14   :  { %167 = vmatprep.subr.mxu0 %v38_v28  ;;  %391 = vmatpush3.msra.mxu1 %v45_v41  ;;  %v33_v57 = vld [vmem:[%s779_s1 + $0x88] sm:$0xff]  ;;  %v16_v58 = vld [vmem:[%s779_s1] sm:$0xff]  ;;  %v110_v60 = vld [vmem:[%s779_s1 + $0x2f0] sm:$0xff] }
  0x15   :  { %168 = vmatpush1.msra.mxu0 %v37_v30  ;;  %392 = vmatprep.subr.mxu1 %v90_v43  ;;  %v30_v61 = vld [vmem:[%s779_s1 + $0x70] sm:$0xff] }
  0x16   :  { %169 = vmatprep.subr.mxu0 %v35_v32  ;;  %393 = vmatpush3.msra.mxu1 %v42_v45 }
  0x17   :  { %170 = vmatpush1.msra.mxu0 %v34_v34  ;;  %394 = vmatprep.subr.mxu1 %v87_v47 }
  0x18   :  { %171 = vmatprep.subr.mxu0 %v32_v36  ;;  %395 = vmatpush3.msra.mxu1 %v39_v49 }
  0x19   :  { %172 = vmatpush1.msra.mxu0 %v31_v38  ;;  %396 = vmatprep.subr.mxu1 %v84_v51 }
  0x1a   :  { %173 = vmatprep.subr.mxu0 %v29_v40  ;;  %397 = vmatpush3.msra.mxu1 %v36_v53 }
  0x1b   :  { %174 = vmatpush1.msra.mxu0 %v28_v42  ;;  %398 = vmatprep.subr.mxu1 %v81_v55 }
  0x1c   :  { %175 = vmatprep.subr.mxu0 %v26_v44 }
  0x1d   :  { %176 = vmatpush1.msra.mxu0 %v25_v46 }
  0x1e   :  { %177 = vmatprep.subr.mxu0 %v23_v48 }
  0x1f   :  { %178 = vmatpush1.msra.mxu0 %v22_v50 }
  0x20   :  { %179 = vmatprep.subr.mxu0 %v20_v52 }
  0x21   :  { %180 = vmatpush1.msra.mxu0 %v19_v54 }
  0x22   :  { %7 = vsyncpa [#allocation3], 0  ;;  %181 = vmatprep.subr.mxu0 %v17_v56  ;;  %v109_v62 = vld [vmem:[%s779_s1 + $0x2e8] sm:$0xff]  ;;  %399 = vmatpush3.msra.mxu1 %v33_v57  ;;  %v75_v63 = vld [vmem:[%s779_s1 + $0x1d8] sm:$0xff]  ;;  %v112_v37 = vlaneseq  ;;  %v452_v41 = vmov 1.0   ;;  %vm327_vm8 = vcmask 523264  }
  0x23   :  { %182 = vmatpush1.msra.mxu0 %v16_v58  ;;  %v107_v0 = vld [vmem:[%s779_s1 + $0x2d8] sm:$0xff]  ;;  %400 = vmatprep.subr.mxu1 %v78_v59  ;;  %v106_v2 = vld [vmem:[%s779_s1 + $0x2d0] sm:$0xff]  ;;  %v72_v3 = vld [vmem:[%s779_s1 + $0x1c0] sm:$0xff] }
  0x24   :  { %v27_v1 = vld [vmem:[%s779_s1 + $0x58] sm:$0xff]  ;;  %183 = vmatprep.subr.mxu0 %v110_v60  ;;  %401 = vmatpush3.msra.mxu1 %v30_v61  ;;  %v104_v4 = vld [vmem:[%s779_s1 + $0x2c0] sm:$0xff]  ;;  %v69_v7 = vld [vmem:[%s779_s1 + $0x1a8] sm:$0xff]  ;;  %v113_v38 = vand.u32 127, %v112_v37 }
  0x25   :  { %184 = vmatpush2.msra.mxu0 %v109_v62  ;;  %402 = vmatprep.subr.mxu1 %v75_v63  ;;  %v24_v5 = vld [vmem:[%s779_s1 + $0x40] sm:$0xff]  ;;  %v103_v6 = vld [vmem:[%s779_s1 + $0x2b8] sm:$0xff]  ;;  %v101_v8 = vld [vmem:[%s779_s1 + $0x2a8] sm:$0xff] }
  0x26   :  { %185 = vmatprep.subr.mxu0 %v107_v0  ;;  %403 = vmatpush3.msra.mxu1 %v27_v1  ;;  %v21_v9 = vld [vmem:[%s779_s1 + $0x28] sm:$0xff]  ;;  %v100_v10 = vld [vmem:[%s779_s1 + $0x2a0] sm:$0xff]  ;;  %v66_v11 = vld [vmem:[%s779_s1 + $0x190] sm:$0xff]  ;;  %v114_v39 = vadd.s32 128, %v113_v38 }
  0x27   :  { %186 = vmatpush2.msra.mxu0 %v106_v2  ;;  %404 = vmatprep.subr.mxu1 %v72_v3  ;;  %v98_v12 = vld [vmem:[%s779_s1 + $0x290] sm:$0xff]  ;;  %v97_v14 = vld [vmem:[%s779_s1 + $0x288] sm:$0xff]  ;;  %v95_v15 = vld [vmem:[%s779_s1 + $0x278] sm:$0xff] }
  0x28   :  { %187 = vmatprep.subr.mxu0 %v104_v4  ;;  %405 = vmatpush3.msra.mxu1 %v24_v5  ;;  %v18_v13 = vld [vmem:[%s779_s1 + $0x10] sm:$0xff]  ;;  %v92_v17 = vld [vmem:[%s779_s1 + $0x260] sm:$0xff]  ;;  %v91_v18 = vld [vmem:[%s779_s1 + $0x258] sm:$0xff] }
  0x29   :  { %188 = vmatpush2.msra.mxu0 %v103_v6  ;;  %406 = vmatprep.subr.mxu1 %v69_v7  ;;  %v94_v16 = vld [vmem:[%s779_s1 + $0x270] sm:$0xff]  ;;  %v89_v19 = vld [vmem:[%s779_s1 + $0x248] sm:$0xff]  ;;  %v88_v20 = vld [vmem:[%s779_s1 + $0x240] sm:$0xff] }
  0x2a   :  { %189 = vmatprep.subr.mxu0 %v101_v8  ;;  %407 = vmatpush3.msra.mxu1 %v21_v9  ;;  %v86_v21 = vld [vmem:[%s779_s1 + $0x230] sm:$0xff]  ;;  %v85_v22 = vld [vmem:[%s779_s1 + $0x228] sm:$0xff]  ;;  %v83_v23 = vld [vmem:[%s779_s1 + $0x218] sm:$0xff] }
  0x2b   :  { %190 = vmatpush2.msra.mxu0 %v100_v10  ;;  %408 = vmatprep.subr.mxu1 %v66_v11  ;;  %v82_v24 = vld [vmem:[%s779_s1 + $0x210] sm:$0xff]  ;;  %v80_v25 = vld [vmem:[%s779_s1 + $0x200] sm:$0xff]  ;;  %v79_v26 = vld [vmem:[%s779_s1 + $0x1f8] sm:$0xff] }
  0x2c   :  { %191 = vmatprep.subr.mxu0 %v98_v12  ;;  %409 = vmatpush3.msra.mxu1 %v18_v13  ;;  %v77_v27 = vld [vmem:[%s779_s1 + $0x1e8] sm:$0xff]  ;;  %v76_v28 = vld [vmem:[%s779_s1 + $0x1e0] sm:$0xff]  ;;  %v74_v29 = vld [vmem:[%s779_s1 + $0x1d0] sm:$0xff] }
  0x2d   :  { %192 = vmatpush2.msra.mxu0 %v97_v14  ;;  %v73_v30 = vld [vmem:[%s779_s1 + $0x1c8] sm:$0xff]  ;;  %v71_v31 = vld [vmem:[%s779_s1 + $0x1b8] sm:$0xff]  ;;  %v70_v32 = vld [vmem:[%s779_s1 + $0x1b0] sm:$0xff] }
  0x2e   :  { %193 = vmatprep.subr.mxu0 %v95_v15  ;;  %v68_v33 = vld [vmem:[%s779_s1 + $0x1a0] sm:$0xff]  ;;  %v67_v34 = vld [vmem:[%s779_s1 + $0x198] sm:$0xff]  ;;  %v65_v35 = vld [vmem:[%s779_s1 + $0x188] sm:$0xff] }
  0x2f   :  { %194 = vmatpush2.msra.mxu0 %v94_v16  ;;  %v64_v36 = vld [vmem:[%s779_s1 + $0x180] sm:$0xff]  ;;  %s453_s1 = smov [#allocation2]  }
  0x30   :  { %195 = vmatprep.subr.mxu0 %v92_v17  ;;  %s343_s6 = sshll.u32 %s453_s1, 4  ;;  %s344_s6 = int_to_ptr.vmem [resolvable:$true] %s343_s6 }
  0x31   :  { %196 = vmatpush2.msra.mxu0 %v91_v18  ;;  %s429_s7 = scalar_lea.vmem %s344_s6, 1536  ;;  %p434_p1 = scmp.lt.s32.totalorder %s344_s6, %s344_s6 }
  0x32   :  { %197 = vmatprep.subr.mxu0 %v89_v19  ;;  %p430_p0 = scmp.ne.s32.totalorder %s344_s6, %s429_s7  ;;  %p435_p2 = scmp.lt.s32.totalorder %s429_s7, %s429_s7 }
  0x33   :  { %198 = vmatpush2.msra.mxu0 %v88_v20 }
  0x34   :  { %199 = vmatprep.subr.mxu0 %v86_v21  ;;  %p436_p3 = por %p435_p2, %p434_p1 }
  0x35   :  { %200 = vmatpush2.msra.mxu0 %v85_v22 }
  0x36   :  { %201 = vmatprep.subr.mxu0 %v83_v23  ;;  %p437_p4 = pnand %p436_p3, %p430_p0 }
  0x37   :  { %202 = vmatpush2.msra.mxu0 %v82_v24 }
  0x38   :  { %203 = vmatprep.subr.mxu0 %v80_v25 }
  0x39   :  { %204 = vmatpush2.msra.mxu0 %v79_v26 }
  0x3a   :  { %205 = vmatprep.subr.mxu0 %v77_v27 }
  0x3b   :  { %206 = vmatpush2.msra.mxu0 %v76_v28 }
  0x3c   :  { %207 = vmatprep.subr.mxu0 %v74_v29 }
  0x3d   :  { %208 = vmatpush2.msra.mxu0 %v73_v30 }
  0x3e   :  { %209 = vmatprep.subr.mxu0 %v71_v31 }
  0x3f   :  { %210 = vmatpush2.msra.mxu0 %v70_v32 }
  0x40   :  { %211 = vmatprep.subr.mxu0 %v68_v33 }
  0x41   :  { %212 = vmatpush2.msra.mxu0 %v67_v34 }
  0x42   :  { %213 = vmatprep.subr.mxu0 %v65_v35 }
  0x43   :  { %214 = vmatpush2.msra.mxu0 %v64_v36 }
  0x7d   :  { %v117_v40 = vpop.permute.xlu0 %116  ;;  %v123_v42 = vpop.permute.xlu1 %122 }
  0x7e   :  { %vm127_vm0 = vcmp.eq.s32.totalorder %v113_v38, %v117_v40  ;;  %vm128_vm1 = vcmp.eq.s32.totalorder %v114_v39, %v117_v40  ;;  %vm132_vm2 = vcmp.eq.s32.totalorder %v114_v39, %v123_v42  ;;  %vm131_vm5 = vcmp.eq.s32.totalorder %v113_v38, %v123_v42 }
  0x7f   :  { %362 = vmatprep.mubr.msk.f32.mxu0 %vm128_vm1, %v452_v41  ;;  %370 = vmatprep.mubr.msk.f32.mxu1 %vm128_vm1, %v452_v41 }
  0x80   :  { %363 = vmatmul.mubr.msk.f32.vlgmr.msra.gmra.mxu0 %vm127_vm0, %v452_v41  ;;  %371 = vmatmul.mubr.msk.f32.vlgmr.msra.gmra.mxu1 %vm127_vm0, %v452_v41 }
  0x81   :  { %v120_v43 = vpop.permute.xlu0 %119  ;;  %v126_v44 = vpop.permute.xlu1 %125 }
  0x82   :  { %vm129_vm3 = vcmp.eq.s32.totalorder %v113_v38, %v120_v43  ;;  %vm130_vm4 = vcmp.eq.s32.totalorder %v114_v39, %v120_v43  ;;  %vm134_vm6 = vcmp.eq.s32.totalorder %v114_v39, %v126_v44  ;;  %vm133_vm7 = vcmp.eq.s32.totalorder %v113_v38, %v126_v44 }
  0x83   :  { %364 = vmatprep.mubr.msk.f32.mxu0 %vm130_vm4, %v452_v41  ;;  %372 = vmatprep.mubr.msk.f32.mxu1 %vm130_vm4, %v452_v41 }
  0x84   :  { %365 = vmatmul.mubr.msk.f32.gmra.mxu0 %vm129_vm3, %v452_v41  ;;  %373 = vmatmul.mubr.msk.f32.gmra.mxu1 %vm129_vm3, %v452_v41 }
  0x85   :  { %366 = vmatprep.mubr.msk.f32.mxu0 %vm132_vm2, %v452_v41  ;;  %374 = vmatprep.mubr.msk.f32.mxu1 %vm132_vm2, %v452_v41 }
  0x88   :  { %367 = vmatmul.mubr.msk.f32.gmra.mxu0 %vm131_vm5, %v452_v41  ;;  %375 = vmatmul.mubr.msk.f32.gmra.mxu1 %vm131_vm5, %v452_v41 }
  0x89   :  { %368 = vmatprep.mubr.msk.f32.mxu0 %vm134_vm6, %v452_v41  ;;  %376 = vmatprep.mubr.msk.f32.mxu1 %vm134_vm6, %v452_v41 }
  0x8c   :  { %369 = vmatmul.mubr.msk.f32.gmra.mxu0 %vm133_vm7, %v452_v41  ;;  %377 = vmatmul.mubr.msk.f32.gmra.mxu1 %vm133_vm7, %v452_v41 }
 0x140   :  { %v217_v45 = vpop.f32.mrf.mxu0  ;;  %v410_v46 = vpop.f32.mrf.mxu1 }
 0x141   :  { %325 = vst [vmem:[#allocation2] sm:$0xff] %v217_v45 }
 0x142   :  { %v219_v47 = vpop.f32.mrf.mxu0  ;;  %v411_v48 = vpop.f32.mrf.mxu1 }
 0x143   :  { %326 = vst [vmem:[#allocation2 + $0x8] sm:$0xff] %v219_v47  ;;  %v412_v49 = vadd.f32 %v411_v48, %v410_v46 }
 0x144   :  { %v223_v50 = vpop.f32.mrf.mxu0  ;;  %v413_v51 = vpop.f32.mrf.mxu1 }
 0x145   :  { %328 = vst.msk [vmem:[#allocation2 + $0x10] sm:$0xff] %vm327_vm8, %v412_v49  ;;  %329 = vst [vmem:[#allocation2 + $0x18] sm:$0xff] %v223_v50 }
 0x146   :  { %v225_v52 = vpop.f32.mrf.mxu0  ;;  %v414_v53 = vpop.f32.mrf.mxu1 }
 0x147   :  { %330 = vst [vmem:[#allocation2 + $0x20] sm:$0xff] %v225_v52  ;;  %v415_v54 = vadd.f32 %v414_v53, %v413_v51 }
 0x148   :  { %v229_v55 = vpop.f32.mrf.mxu0  ;;  %v416_v56 = vpop.f32.mrf.mxu1 }
 0x149   :  { %331 = vst.msk [vmem:[#allocation2 + $0x28] sm:$0xff] %vm327_vm8, %v415_v54  ;;  %332 = vst [vmem:[#allocation2 + $0x30] sm:$0xff] %v229_v55 }
 0x14a   :  { %v231_v57 = vpop.f32.mrf.mxu0  ;;  %v417_v58 = vpop.f32.mrf.mxu1 }
 0x14b   :  { %333 = vst [vmem:[#allocation2 + $0x38] sm:$0xff] %v231_v57  ;;  %v418_v59 = vadd.f32 %v417_v58, %v416_v56 }
 0x14c   :  { %v235_v60 = vpop.f32.mrf.mxu0  ;;  %v419_v61 = vpop.f32.mrf.mxu1 }
 0x14d   :  { %334 = vst.msk [vmem:[#allocation2 + $0x40] sm:$0xff] %vm327_vm8, %v418_v59  ;;  %335 = vst [vmem:[#allocation2 + $0x48] sm:$0xff] %v235_v60 }
 0x14e   :  { %v237_v62 = vpop.f32.mrf.mxu0  ;;  %v420_v63 = vpop.f32.mrf.mxu1 }
 0x14f   :  { %336 = vst [vmem:[#allocation2 + $0x50] sm:$0xff] %v237_v62  ;;  %v421_v0 = vadd.f32 %v420_v63, %v419_v61 }
 0x151   :  { %337 = vst.msk [vmem:[#allocation2 + $0x58] sm:$0xff] %vm327_vm8, %v421_v0 }
 0x152   :  { %440 = shalt.err (!%p437_p4)
}
 0x153   :  { %s454_s8 = smov 384   ;;  %s455_s9 = smov 24  }
 0x154   :  { %349 = dma.vmem_to_hbm [thread:$0]  %s344_s6, 1536, %s780_s2, [#allocation3], %s454_s8, %s454_s8, %s455_s9  }
 0x155   :  { %449 = dma.done.wait [#allocation3], 1536  }
 0x156   :  { %450 = vsyncadd [#allocation3], 4294965760 }
 0x157   :  { %353 = vsyncpa [#allocation3], 1 }

</bundles_post_ra>
